<compile_context>
chip_gen: v7x
topology: tpu7x:2x2x1
jax: 0.10.0
libtpu: 0.0.40
codegen_flags: <defaults>
</compile_context>

<pallas_src>
import math

import jax
import jax.numpy as jnp
from jax.experimental import pallas as pl
from jax.experimental.pallas import tpu as pltpu


def _round_up(x, m):
    return pl.cdiv(x, m) * m


def _ffn_kernel(x_ref, wa_ref, wg_ref, b1a_ref, b1g_ref, w2_ref, b2_ref, o_ref):
    # x_ref:  (tm, dim_p)        [compute dtype, e.g. bf16]
    # wa_ref: (dim_p, hid_p)     first half of W1 (the "a" branch)
    # wg_ref: (dim_p, hid_p)     second half of W1 (the "gates" branch)
    # b1a_ref/b1g_ref: (1, hid_p) f32 biases
    # w2_ref: (hid_p, dim_p)     second linear
    # b2_ref: (1, dim_p) f32
    # o_ref:  (tm, dim_p)
    x = x_ref[...]

    # Two lane-dense dots instead of one wide dot + half-slicing.
    a = jnp.dot(x, wa_ref[...], preferred_element_type=jnp.float32) + b1a_ref[...]
    g = jnp.dot(x, wg_ref[...], preferred_element_type=jnp.float32) + b1g_ref[...]

    # Exact GELU (erf variant) to match torch.nn.functional.gelu default, in f32.
    inv_sqrt2 = jnp.float32(1.0 / math.sqrt(2.0))
    gelu_g = 0.5 * g * (1.0 + jax.lax.erf(g * inv_sqrt2))

    # GEGLU; Dropout(p=0.0) is the identity.
    y = (a * gelu_g).astype(w2_ref.dtype)

    out = jnp.dot(y, w2_ref[...], preferred_element_type=jnp.float32) + b2_ref[...]
    o_ref[...] = out.astype(o_ref.dtype)


def feed_forward(x, w1, b1, w2, b2, *, tm=256, compute_dtype=jnp.bfloat16):
    """x: (B, S, dim). w1: (dim, 2*hidden), b1: (2*hidden,),
    w2: (hidden, dim), b2: (dim,). Weights stored as (in, out) = torch W^T."""
    B, S, dim = x.shape
    two_hidden = w1.shape[1]
    hidden = two_hidden // 2
    M = B * S

    # Lane-dense padding of feature dims; row padding to a multiple of tm.
    dim_p = _round_up(dim, 128)
    hid_p = _round_up(hidden, 128)
    m_p = _round_up(M, tm)

    # ---- wrapper-side layout prep (zero padding preserves the math) ----
    x2d = jnp.pad(x.reshape(M, dim), ((0, m_p - M), (0, dim_p - dim)))
    wa = jnp.pad(w1[:, :hidden], ((0, dim_p - dim), (0, hid_p - hidden)))
    wg = jnp.pad(w1[:, hidden:], ((0, dim_p - dim), (0, hid_p - hidden)))
    b1a = jnp.pad(b1[:hidden], (0, hid_p - hidden)).reshape(1, hid_p)
    b1g = jnp.pad(b1[hidden:], (0, hid_p - hidden)).reshape(1, hid_p)
    w2p = jnp.pad(w2, ((0, hid_p - hidden), (0, dim_p - dim)))
    b2p = jnp.pad(b2, (0, dim_p - dim)).reshape(1, dim_p)

    # MXU-friendly matmul inputs; biases / accumulation stay f32.
    xc = x2d.astype(compute_dtype)
    wa = wa.astype(compute_dtype)
    wg = wg.astype(compute_dtype)
    w2p = w2p.astype(compute_dtype)
    b1a = b1a.astype(jnp.float32)
    b1g = b1g.astype(jnp.float32)
    b2p = b2p.astype(jnp.float32)

    grid = (m_p // tm,)

    in_itemsize = jnp.dtype(compute_dtype).itemsize
    out_itemsize = jnp.dtype(x.dtype).itemsize
    cost = pl.CostEstimate(
        flops=6 * m_p * dim_p * hid_p,                 # 2 dots of (dim_p,hid_p) + 1 of (hid_p,dim_p)
        transcendentals=m_p * hid_p,                   # erf per gate element
        bytes_accessed=(m_p * dim_p * in_itemsize      # x
                        + 3 * dim_p * hid_p * in_itemsize   # Wa, Wg, W2
                        + (2 * hid_p + dim_p) * 4           # biases (f32)
                        + m_p * dim_p * out_itemsize),       # output
    )

    out2d = pl.pallas_call(
        _ffn_kernel,
        out_shape=jax.ShapeDtypeStruct((m_p, dim_p), x.dtype),
        grid_spec=pltpu.PrefetchScalarGridSpec(
            num_scalar_prefetch=0,
            grid=grid,
            in_specs=[
                pl.BlockSpec((tm, dim_p), lambda i: (i, 0)),     # x rows
                pl.BlockSpec((dim_p, hid_p), lambda i: (0, 0)),  # Wa (resident)
                pl.BlockSpec((dim_p, hid_p), lambda i: (0, 0)),  # Wg (resident)
                pl.BlockSpec((1, hid_p), lambda i: (0, 0)),      # b1a
                pl.BlockSpec((1, hid_p), lambda i: (0, 0)),      # b1g
                pl.BlockSpec((hid_p, dim_p), lambda i: (0, 0)),  # W2 (resident)
                pl.BlockSpec((1, dim_p), lambda i: (0, 0)),      # b2
            ],
            out_specs=pl.BlockSpec((tm, dim_p), lambda i: (i, 0)),
        ),
        compiler_params=pltpu.CompilerParams(
            dimension_semantics=("parallel",),
            vmem_limit_bytes=64 * 1024 * 1024,  # raise scoped-VMEM cap (<= physical on all gens)
        ),
        cost_estimate=cost,
    )(xc, wa, wg, b1a, b1g, w2p, b2p)

    # TODO(synk): for very large dim/hidden (e.g. dim>=1024, mult=4) add a hidden-chunk
    # grid axis with an f32 VMEM accumulator instead of whole-weight residency (v7x 64 MiB).
    return out2d[:M, :dim].reshape(B, S, dim)


def init_params(key, dim, mult=4, dtype=jnp.float32):
    """Deterministic init mimicking nn.Linear defaults (uniform +-1/sqrt(fan_in))."""
    hidden = dim * mult
    k1, k2, k3, k4 = jax.random.split(key, 4)
    bound1 = 1.0 / math.sqrt(dim)
    bound2 = 1.0 / math.sqrt(hidden)
    # Stored as (in, out) == transposed torch weight.
    w1 = jax.random.uniform(k1, (dim, 2 * hidden), dtype, -bound1, bound1)
    b1 = jax.random.uniform(k2, (2 * hidden,), dtype, -bound1, bound1)
    w2 = jax.random.uniform(k3, (hidden, dim), dtype, -bound2, bound2)
    b2 = jax.random.uniform(k4, (dim,), dtype, -bound2, bound2)
    return w1, b1, w2, b2


def feed_forward_ref(x, w1, b1, w2, b2):
    """Pure-JAX f32 reference for sanity checking."""
    h = jnp.einsum("bsd,dh->bsh", x, w1) + b1
    hidden = h.shape[-1] // 2
    a, g = h[..., :hidden], h[..., hidden:]
    y = a * (0.5 * g * (1.0 + jax.lax.erf(g / jnp.sqrt(2.0))))
    return jnp.einsum("bsh,hd->bsd", y, w2) + b2


if __name__ == "__main__":
    key = jax.random.PRNGKey(0)
    k_x, k_p = jax.random.split(key)

    B, S, dim, mult = 2, 8, 32, 4
    x = jax.random.normal(k_x, (B, S, dim), jnp.float32)
    w1, b1, w2, b2 = init_params(k_p, dim, mult)

    out = feed_forward(x, w1, b1, w2, b2)
    out = jax.block_until_ready(out)

    ref = feed_forward_ref(x, w1, b1, w2, b2)
    assert out.shape == (B, S, dim)
    # bf16 matmul inputs with f32 accumulation -> loosened tolerance vs f32 ref.
    assert jnp.allclose(out, ref, atol=5e-2, rtol=5e-2), (
        "mismatch vs reference: max abs diff "
        f"{float(jnp.max(jnp.abs(out - ref)))}"
    )

    print("KERNEL_OK")
</pallas_src>

<mosaic_0001>
module attributes {stable_mosaic.version = 11 : i64} {
  func.func @_ffn_kernel(%arg0: i32, %arg1: memref<256x128xbf16, #tpu.memory_space<vmem>>, %arg2: memref<128x128xbf16, #tpu.memory_space<vmem>>, %arg3: memref<128x128xbf16, #tpu.memory_space<vmem>>, %arg4: memref<1x128xf32, #tpu.memory_space<vmem>>, %arg5: memref<1x128xf32, #tpu.memory_space<vmem>>, %arg6: memref<128x128xbf16, #tpu.memory_space<vmem>>, %arg7: memref<1x128xf32, #tpu.memory_space<vmem>>, %arg8: memref<256x128xf32, #tpu.memory_space<vmem>>) attributes {dimension_semantics = [#tpu.dimension_semantics<parallel>], iteration_bounds = array<i64: 1>, scalar_prefetch = 0 : i64, scratch_operands = 0 : i64, tpu.core_type = #tpu.core_type<tc>, window_params = [{transform_indices = @transform_0, window_bounds = array<i64: 256, 128>}, {pipeline_mode = #tpu.pipeline_mode<synchronous>, transform_indices = @transform_1, window_bounds = array<i64: 128, 128>}, {pipeline_mode = #tpu.pipeline_mode<synchronous>, transform_indices = @transform_2, window_bounds = array<i64: 128, 128>}, {pipeline_mode = #tpu.pipeline_mode<synchronous>, transform_indices = @transform_3, window_bounds = array<i64: 1, 128>}, {pipeline_mode = #tpu.pipeline_mode<synchronous>, transform_indices = @transform_4, window_bounds = array<i64: 1, 128>}, {pipeline_mode = #tpu.pipeline_mode<synchronous>, transform_indices = @transform_5, window_bounds = array<i64: 128, 128>}, {pipeline_mode = #tpu.pipeline_mode<synchronous>, transform_indices = @transform_6, window_bounds = array<i64: 1, 128>}, {transform_indices = @transform_7, window_bounds = array<i64: 256, 128>}]} {
    %c0 = arith.constant 0 : index
    %c0_0 = arith.constant 0 : index
    %0 = vector.load %arg1[%c0, %c0_0] : memref<256x128xbf16, #tpu.memory_space<vmem>>, vector<256x128xbf16>
    %c0_1 = arith.constant 0 : index
    %c0_2 = arith.constant 0 : index
    %1 = vector.load %arg2[%c0_1, %c0_2] : memref<128x128xbf16, #tpu.memory_space<vmem>>, vector<128x128xbf16>
    %cst = arith.constant dense<0.000000e+00> : vector<256x128xf32>
    %2 = tpu.matmul %0, %1, %cst {dimension_numbers = #tpu.dot_dimension_numbers<[1], [0], [0], [1], [0, 0, 1, 1], [], []>} : vector<256x128xbf16>, vector<128x128xbf16>, vector<256x128xf32> -> vector<256x128xf32>
    %c0_3 = arith.constant 0 : index
    %c0_4 = arith.constant 0 : index
    %3 = vector.load %arg4[%c0_3, %c0_4] : memref<1x128xf32, #tpu.memory_space<vmem>>, vector<1x128xf32>
    %4 = vector.broadcast %3 : vector<1x128xf32> to vector<256x128xf32>
    %5 = arith.addf %2, %4 : vector<256x128xf32>
    %c0_5 = arith.constant 0 : index
    %c0_6 = arith.constant 0 : index
    %6 = vector.load %arg3[%c0_5, %c0_6] : memref<128x128xbf16, #tpu.memory_space<vmem>>, vector<128x128xbf16>
    %cst_7 = arith.constant dense<0.000000e+00> : vector<256x128xf32>
    %7 = tpu.matmul %0, %6, %cst_7 {dimension_numbers = #tpu.dot_dimension_numbers<[1], [0], [0], [1], [0, 0, 1, 1], [], []>} : vector<256x128xbf16>, vector<128x128xbf16>, vector<256x128xf32> -> vector<256x128xf32>
    %c0_8 = arith.constant 0 : index
    %c0_9 = arith.constant 0 : index
    %8 = vector.load %arg5[%c0_8, %c0_9] : memref<1x128xf32, #tpu.memory_space<vmem>>, vector<1x128xf32>
    %9 = vector.broadcast %8 : vector<1x128xf32> to vector<256x128xf32>
    %10 = arith.addf %7, %9 : vector<256x128xf32>
    %cst_10 = arith.constant 5.000000e-01 : f32
    %11 = vector.broadcast %cst_10 : f32 to vector<256x128xf32>
    %12 = arith.mulf %11, %10 : vector<256x128xf32>
    %cst_11 = arith.constant 0.707106769 : f32
    %13 = vector.broadcast %cst_11 : f32 to vector<256x128xf32>
    %14 = arith.mulf %10, %13 : vector<256x128xf32>
    %15 = math.erf %14 : vector<256x128xf32>
    %cst_12 = arith.constant 1.000000e+00 : f32
    %16 = vector.broadcast %cst_12 : f32 to vector<256x128xf32>
    %17 = arith.addf %16, %15 : vector<256x128xf32>
    %18 = arith.mulf %12, %17 : vector<256x128xf32>
    %19 = arith.mulf %5, %18 : vector<256x128xf32>
    %20 = arith.truncf %19 : vector<256x128xf32> to vector<256x128xbf16>
    %c0_13 = arith.constant 0 : index
    %c0_14 = arith.constant 0 : index
    %21 = vector.load %arg6[%c0_13, %c0_14] : memref<128x128xbf16, #tpu.memory_space<vmem>>, vector<128x128xbf16>
    %cst_15 = arith.constant dense<0.000000e+00> : vector<256x128xf32>
    %22 = tpu.matmul %20, %21, %cst_15 {dimension_numbers = #tpu.dot_dimension_numbers<[1], [0], [0], [1], [0, 0, 1, 1], [], []>} : vector<256x128xbf16>, vector<128x128xbf16>, vector<256x128xf32> -> vector<256x128xf32>
    %c0_16 = arith.constant 0 : index
    %c0_17 = arith.constant 0 : index
    %23 = vector.load %arg7[%c0_16, %c0_17] : memref<1x128xf32, #tpu.memory_space<vmem>>, vector<1x128xf32>
    %24 = vector.broadcast %23 : vector<1x128xf32> to vector<256x128xf32>
    %25 = arith.addf %22, %24 : vector<256x128xf32>
    %c0_18 = arith.constant 0 : index
    %c0_19 = arith.constant 0 : index
    %26 = vector.load %arg8[%c0_18, %c0_19] : memref<256x128xf32, #tpu.memory_space<vmem>>, vector<256x128xf32>
    tpu.vector_store %arg8[%c0_18, %c0_19], %25 {strides = array<i32>} : memref<256x128xf32, #tpu.memory_space<vmem>>, vector<256x128xf32>,
    return
  }
  func.func @transform_0(%arg0: i32) -> (i32, i32) {
    %c0_i32 = arith.constant 0 : i32
    %c0_i32_0 = arith.constant 0 : i32
    return %arg0, %c0_i32 : i32, i32
  }
  func.func @transform_1(%arg0: i32) -> (i32, i32) {
    %c0_i32 = arith.constant 0 : i32
    %c0_i32_0 = arith.constant 0 : i32
    %c0_i32_1 = arith.constant 0 : i32
    return %c0_i32, %c0_i32_0 : i32, i32
  }
  func.func @transform_2(%arg0: i32) -> (i32, i32) {
    %c0_i32 = arith.constant 0 : i32
    %c0_i32_0 = arith.constant 0 : i32
    %c0_i32_1 = arith.constant 0 : i32
    return %c0_i32, %c0_i32_0 : i32, i32
  }
  func.func @transform_3(%arg0: i32) -> (i32, i32) {
    %c0_i32 = arith.constant 0 : i32
    %c0_i32_0 = arith.constant 0 : i32
    %c0_i32_1 = arith.constant 0 : i32
    return %c0_i32, %c0_i32_0 : i32, i32
  }
  func.func @transform_4(%arg0: i32) -> (i32, i32) {
    %c0_i32 = arith.constant 0 : i32
    %c0_i32_0 = arith.constant 0 : i32
    %c0_i32_1 = arith.constant 0 : i32
    return %c0_i32, %c0_i32_0 : i32, i32
  }
  func.func @transform_5(%arg0: i32) -> (i32, i32) {
    %c0_i32 = arith.constant 0 : i32
    %c0_i32_0 = arith.constant 0 : i32
    %c0_i32_1 = arith.constant 0 : i32
    return %c0_i32, %c0_i32_0 : i32, i32
  }
  func.func @transform_6(%arg0: i32) -> (i32, i32) {
    %c0_i32 = arith.constant 0 : i32
    %c0_i32_0 = arith.constant 0 : i32
    %c0_i32_1 = arith.constant 0 : i32
    return %c0_i32, %c0_i32_0 : i32, i32
  }
  func.func @transform_7(%arg0: i32) -> (i32, i32) {
    %c0_i32 = arith.constant 0 : i32
    %c0_i32_0 = arith.constant 0 : i32
    return %arg0, %c0_i32 : i32, i32
  }
}

</mosaic_0001>

<bundles_post_ra>
// kernel: tpu_custom_call.1
= control target key start
LH: loop header
LB: loop body
LE: loop exit
PB: predicated region body
PF: predicated region fallthrough
CT: control target
= control target key end

     0   :  { %12 = vsyncpa [#allocation3], 0  ;;  %s2259_s0 = inlined_call_operand.hbm [shape: bf16[256,128], index: 0, kind: input, shape index: {}]   ;;  %s2260_s1 = inlined_call_operand.hbm [shape: bf16[128,128], index: 1, kind: input, shape index: {}]   ;;  %s2261_s2 = inlined_call_operand.hbm [shape: bf16[128,128], index: 2, kind: input, shape index: {}]   ;;  %s2262_s3 = inlined_call_operand.hbm [shape: f32[1,128], index: 3, kind: input, shape index: {}]   ;;  %s2263_s4 = inlined_call_operand.hbm [shape: f32[1,128], index: 4, kind: input, shape index: {}]   ;;  %s2264_s5 = inlined_call_operand.hbm [shape: bf16[128,128], index: 5, kind: input, shape index: {}]   ;;  %s2265_s6 = inlined_call_operand.hbm [shape: f32[1,128], index: 6, kind: input, shape index: {}]   ;;  %s2266_s7 = inlined_call_operand.hbm [shape: f32[256,128], index: 7, kind: output, shape index: {}]  }
   0x1   :  { %13 = vsyncpa [#allocation6], 0 }
   0x2   :  { %14 = vsyncpa [#allocation9], 0 }
   0x3   :  { %15 = vsyncpa [#allocation12], 0 }
   0x4   :  { %16 = vsyncpa [#allocation4], 0  ;;  %s1778_s24 = smov [#allocation5]   ;;  %s1779_s26 = smov [#allocation8]  }
   0x5   :  { %s34_s25 = sshll.u32 %s1778_s24, 4  ;;  %s59_s27 = sshll.u32 %s1779_s26, 4  ;;  %s35_s25 = int_to_ptr.vmem [resolvable:$true] %s34_s25  ;;  %s1830_s27 = int_to_ptr.vmem [resolvable:$true] %s59_s27 }
   0x6   :  { %s1592_s30 = scalar_lea.hbm %s2260_s1, 1024 }
   0x7   :  { %p1593_p0 = scmp.ne.s32.totalorder %s2260_s1, %s1592_s30  ;;  %p1596_p1 = scmp.lt.u32.totalorder %s1592_s30, %s2260_s1 }
   0x9   :  { %p1598_p2 = pnand %p1596_p1, %p1593_p0 }
   0xb   :  { %1601 = shalt.err (!%p1598_p2)
}
   0xc   :  { %s1602_s12 = scalar_lea.vmem %s35_s25, 1024  ;;  %p1607_p4 = scmp.lt.s32.totalorder %s35_s25, %s35_s25 }
   0xd   :  { %p1603_p3 = scmp.ne.s32.totalorder %s35_s25, %s1602_s12  ;;  %p1608_p5 = scmp.lt.s32.totalorder %s1602_s12, %s1602_s12 }
   0xf   :  { %p1609_p6 = por %p1608_p5, %p1607_p4 }
  0x11   :  { %p1610_p7 = pnand %p1609_p6, %p1603_p3 }
  0x13   :  { %1613 = shalt.err (!%p1610_p7)
}
  0x14   :  { %s1780_s13 = smov 64   ;;  %s1781_s14 = smov 4  }
  0x15   :  { %40 = dma.hbm_to_vmem [thread:$0]  %s2260_s1, 1024, %s35_s25, [#allocation6], %s1780_s13, %s1780_s13, %s1781_s14  }
  0x16   :  { %s1614_s19 = scalar_lea.hbm %s2262_s3, 16 }
  0x17   :  { %p1615_p8 = scmp.ne.s32.totalorder %s2262_s3, %s1614_s19  ;;  %p1618_p9 = scmp.lt.u32.totalorder %s1614_s19, %s2262_s3 }
  0x19   :  { %p1620_p10 = pnand %p1618_p9, %p1615_p8 }
  0x1b   :  { %1623 = shalt.err (!%p1620_p10)
}
  0x1c   :  { %s1624_s24 = scalar_lea.vmem %s1830_s27, 16  ;;  %s1628_s1 = scalar_lea.vmem %s1830_s27, 32 }
  0x1d   :  { %p1625_p11 = scmp.ne.s32.totalorder %s1830_s27, %s1624_s24  ;;  %p1629_p12 = scmp.lt.s32.totalorder %s1830_s27, %s1830_s27 }
  0x1e   :  { %p1630_p13 = scmp.lt.s32.totalorder %s1628_s1, %s1624_s24 }
  0x20   :  { %p1631_p0 = por %p1630_p13, %p1629_p12 }
  0x22   :  { %p1632_p1 = pnand %p1631_p0, %p1625_p11 }
  0x24   :  { %1635 = shalt.err (!%p1632_p1)
}
  0x25   :  { %62 = dma.hbm_to_vmem [thread:$0]  %s2262_s3, 16, %s1830_s27, [#allocation9]  }
  0x26   :  { %s1782_s28 = smov [#allocation11]   ;;  %s1783_s30 = smov [#allocation2]  }
  0x27   :  { %s78_s29 = sshll.u32 %s1782_s28, 4  ;;  %s22_s8 = sshll.u32 %s1783_s30, 4  ;;  %s79_s29 = int_to_ptr.vmem [resolvable:$true] %s78_s29  ;;  %s1865_s8 = int_to_ptr.vmem [resolvable:$true] %s22_s8 }
  0x28   :  { %s1636_s11 = scalar_lea.hbm %s2264_s5, 1024 }
  0x29   :  { %p1637_p2 = scmp.ne.s32.totalorder %s2264_s5, %s1636_s11  ;;  %p1640_p3 = scmp.lt.u32.totalorder %s1636_s11, %s2264_s5 }
  0x2b   :  { %p1642_p4 = pnand %p1640_p3, %p1637_p2 }
  0x2d   :  { %1645 = shalt.err (!%p1642_p4)
}
  0x2e   :  { %s1646_s3 = scalar_lea.vmem %s79_s29, 1024  ;;  %p1651_p6 = scmp.lt.s32.totalorder %s79_s29, %s79_s29 }
  0x2f   :  { %p1647_p5 = scmp.ne.s32.totalorder %s79_s29, %s1646_s3  ;;  %p1652_p7 = scmp.lt.s32.totalorder %s1646_s3, %s1646_s3 }
  0x31   :  { %p1653_p8 = por %p1652_p7, %p1651_p6 }
  0x33   :  { %p1654_p9 = pnand %p1653_p8, %p1647_p5 }
  0x35   :  { %1657 = shalt.err (!%p1654_p9)
}
  0x36   :  { %84 = dma.hbm_to_vmem [thread:$0]  %s2264_s5, 1024, %s79_s29, [#allocation12], %s1780_s13, %s1780_s13, %s1781_s14  }
  0x37   :  { %s1658_s21 = scalar_lea.hbm %s2259_s0, 2048 }
  0x38   :  { %p1659_p10 = scmp.ne.s32.totalorder %s2259_s0, %s1658_s21  ;;  %p1662_p11 = scmp.lt.u32.totalorder %s1658_s21, %s2259_s0 }
  0x3a   :  { %p1664_p12 = pnand %p1662_p11, %p1659_p10 }
  0x3c   :  { %1667 = shalt.err (!%p1664_p12)
}
  0x3d   :  { %s1668_s25 = scalar_lea.vmem %s1865_s8, 2048  ;;  %p1673_p0 = scmp.lt.s32.totalorder %s1865_s8, %s1865_s8 }
  0x3e   :  { %p1669_p13 = scmp.ne.s32.totalorder %s1865_s8, %s1668_s25  ;;  %p1674_p1 = scmp.lt.s32.totalorder %s1668_s25, %s1668_s25 }
  0x40   :  { %p1675_p2 = por %p1674_p1, %p1673_p0 }
  0x42   :  { %p1676_p3 = pnand %p1675_p2, %p1669_p13 }
  0x44   :  { %1679 = shalt.err (!%p1676_p3)
}
  0x45   :  { %28 = dma.hbm_to_vmem [thread:$0]  %s2259_s0, 2048, %s1865_s8, [#allocation3], %s1780_s13, %s1780_s13, %s1781_s14  }
  0x46   :  { %s1784_s28 = smov [#allocation7]   ;;  %s1785_s30 = smov [#allocation10]  }
  0x47   :  { %s46_s29 = sshll.u32 %s1784_s28, 4  ;;  %s69_s9 = sshll.u32 %s1785_s30, 4  ;;  %s47_s29 = int_to_ptr.vmem [resolvable:$true] %s46_s29  ;;  %s70_s9 = int_to_ptr.vmem [resolvable:$true] %s69_s9 }
  0x48   :  { %s1680_s12 = scalar_lea.hbm %s2261_s2, 1024 }
  0x49   :  { %p1681_p4 = scmp.ne.s32.totalorder %s2261_s2, %s1680_s12  ;;  %p1684_p5 = scmp.lt.u32.totalorder %s1680_s12, %s2261_s2 }
  0x4b   :  { %p1686_p6 = pnand %p1684_p5, %p1681_p4 }
  0x4d   :  { %1689 = shalt.err (!%p1686_p6)
}
  0x4e   :  { %s1690_s0 = scalar_lea.vmem %s47_s29, 1024  ;;  %p1695_p8 = scmp.lt.s32.totalorder %s47_s29, %s47_s29 }
  0x4f   :  { %p1691_p7 = scmp.ne.s32.totalorder %s47_s29, %s1690_s0  ;;  %p1696_p9 = scmp.lt.s32.totalorder %s1690_s0, %s1690_s0 }
  0x51   :  { %p1697_p10 = por %p1696_p9, %p1695_p8 }
  0x53   :  { %p1698_p11 = pnand %p1697_p10, %p1691_p7 }
  0x55   :  { %1701 = shalt.err (!%p1698_p11)
}
  0x56   :  { %52 = dma.hbm_to_vmem [thread:$0]  %s2261_s2, 1024, %s47_s29, [#allocation6], %s1780_s13, %s1780_s13, %s1781_s14  }
  0x57   :  { %s1702_s20 = scalar_lea.hbm %s2263_s4, 16 }
  0x58   :  { %p1703_p12 = scmp.ne.s32.totalorder %s2263_s4, %s1702_s20  ;;  %p1706_p13 = scmp.lt.u32.totalorder %s1702_s20, %s2263_s4 }
  0x5a   :  { %p1708_p0 = pnand %p1706_p13, %p1703_p12 }
  0x5c   :  { %1711 = shalt.err (!%p1708_p0)
}
  0x5d   :  { %s1712_s1 = scalar_lea.vmem %s70_s9, 16  ;;  %s1716_s25 = scalar_lea.vmem %s70_s9, 32 }
  0x5e   :  { %p1713_p1 = scmp.ne.s32.totalorder %s70_s9, %s1712_s1  ;;  %p1717_p2 = scmp.lt.s32.totalorder %s70_s9, %s70_s9 }
  0x5f   :  { %p1718_p3 = scmp.lt.s32.totalorder %s1716_s25, %s1712_s1 }
  0x61   :  { %p1719_p4 = por %p1718_p3, %p1717_p2 }
  0x63   :  { %p1720_p5 = pnand %p1719_p4, %p1713_p1 }
  0x65   :  { %1723 = shalt.err (!%p1720_p5)
}
  0x66   :  { %72 = dma.hbm_to_vmem [thread:$0]  %s2263_s4, 16, %s70_s9, [#allocation9]  }
  0x67   :  { %s1786_s14 = smov [#allocation13]   ;;  %s1724_s29 = scalar_lea.hbm %s2265_s6, 16 }
  0x68   :  { %s91_s5 = sshll.u32 %s1786_s14, 4  ;;  %p1725_p6 = scmp.ne.s32.totalorder %s2265_s6, %s1724_s29  ;;  %s92_s5 = int_to_ptr.vmem [resolvable:$true] %s91_s5 }
  0x69   :  { %p1728_p7 = scmp.lt.u32.totalorder %s1724_s29, %s2265_s6 }
  0x6b   :  { %p1730_p8 = pnand %p1728_p7, %p1725_p6 }
  0x6d   :  { %1733 = shalt.err (!%p1730_p8)
}
  0x6e   :  { %s1734_s15 = scalar_lea.vmem %s92_s5, 16  ;;  %s1738_s4 = scalar_lea.vmem %s92_s5, 32 }
  0x6f   :  { %p1735_p9 = scmp.ne.s32.totalorder %s92_s5, %s1734_s15  ;;  %p1739_p10 = scmp.lt.s32.totalorder %s92_s5, %s92_s5 }
  0x70   :  { %p1740_p11 = scmp.lt.s32.totalorder %s1738_s4, %s1734_s15 }
  0x72   :  { %p1741_p12 = por %p1740_p11, %p1739_p10 }
  0x74   :  { %p1742_p13 = pnand %p1741_p12, %p1735_p9 }
  0x76   :  { %1745 = shalt.err (!%p1742_p13)
}
  0x77   :  { %94 = dma.hbm_to_vmem [thread:$0]  %s2265_s6, 16, %s92_s5, [#allocation12]  }
  0x78   :  { %1768 = dma.done.wait [#allocation3], 2048  }
  0x79   :  { %1769 = vsyncadd [#allocation3], 4294965248 }
  0x7a   :  { %1770 = dma.done.wait [#allocation6], 2048  }
  0x7b   :  { %1771 = vsyncadd [#allocation6], 4294965248 }
  0x7c   :  { %1772 = dma.done.wait [#allocation9], 32  }
  0x7d   :  { %1773 = vsyncadd [#allocation9], 4294967264 }
  0x7e   :  { %1774 = dma.done.wait [#allocation12], 1040  }
  0x7f   :  { %1775 = vsyncadd [#allocation12], 4294966256  ;;  %v1488_v0 = vld [vmem:[#allocation5] sm:$0xff]   ;;  %v1489_v1 = vld [vmem:[#allocation5 + $0x8] sm:$0xff]   ;;  %s1787_s6 = smov [#allocation14]  }
  0x80   :  { %1460 = vmatprep.subr.bf16.mxu1 %v1488_v0  ;;  %1316 = vmatprep.subr.bf16.mxu0 %v1488_v0  ;;  %v1490_v2 = vld [vmem:[#allocation5 + $0x10] sm:$0xff]   ;;  %v1491_v3 = vld [vmem:[#allocation5 + $0x18] sm:$0xff]   ;;  %v1941_v4 = vld [vmem:[#allocation2 + $0x40] sm:$0xff]   ;;  %s1186_s17 = sshll.u32 %s1787_s6, 4  ;;  %s1187_s17 = int_to_ptr.vmem [resolvable:$true] %s1186_s17 }
  0x81   :  { %1468 = vmatpush3.bf16.msra.mxu1 %v1488_v0  ;;  %1317 = vmatpush3.bf16.msra.mxu0 %v1488_v0  ;;  %v1492_v5 = vld [vmem:[#allocation5 + $0x20] sm:$0xff]   ;;  %v1493_v6 = vld [vmem:[#allocation5 + $0x28] sm:$0xff]   ;;  %v1494_v7 = vld [vmem:[#allocation5 + $0x30] sm:$0xff]   ;;  %s1746_s3 = scalar_lea.vmem %s1187_s17, 4096  ;;  %p1751_p1 = scmp.lt.s32.totalorder %s1187_s17, %s1187_s17 }
  0x82   :  { %1461 = vmatprep.subr.bf16.mxu1 %v1489_v1  ;;  %1318 = vmatprep.subr.bf16.mxu0 %v1489_v1  ;;  %v1495_v8 = vld [vmem:[#allocation5 + $0x38] sm:$0xff]   ;;  %v1512_v9 = vld [vmem:[#allocation2] sm:$0xff]   ;;  %v1497_v11 = vld [vmem:[#allocation2 + $0x48] sm:$0xff]   ;;  %p1747_p0 = scmp.ne.s32.totalorder %s1187_s17, %s1746_s3  ;;  %p1752_p2 = scmp.lt.s32.totalorder %s1746_s3, %s1746_s3 }
  0x83   :  { %1348 = vmatprep.mubr.bf16.mxu1 %v1941_v4  ;;  %1332 = vmatprep.mubr.bf16.mxu0 %v1512_v9  ;;  %v1498_v10 = vld [vmem:[#allocation7] sm:$0xff]   ;;  %v1499_v12 = vld [vmem:[#allocation7 + $0x8] sm:$0xff]   ;;  %v1500_v13 = vld [vmem:[#allocation2 + $0x50] sm:$0xff]  }
  0x84   :  { %v1513_v14 = vld [vmem:[#allocation2 + $0x8] sm:$0xff]   ;;  %v1514_v15 = vld [vmem:[#allocation2 + $0x10] sm:$0xff]   ;;  %v1501_v17 = vld [vmem:[#allocation2 + $0x58] sm:$0xff]   ;;  %p1753_p3 = por %p1752_p2, %p1751_p1 }
  0x85   :  { %1469 = vmatpush3.bf16.msra.mxu1 %v1489_v1  ;;  %1319 = vmatpush3.bf16.msra.mxu0 %v1489_v1  ;;  %v1502_v16 = vld [vmem:[#allocation7 + $0x10] sm:$0xff]   ;;  %v1504_v18 = vld [vmem:[#allocation2 + $0x60] sm:$0xff]   ;;  %v1503_v19 = vld [vmem:[#allocation7 + $0x18] sm:$0xff]  }
  0x86   :  { %1462 = vmatprep.subr.bf16.mxu1 %v1490_v2  ;;  %1320 = vmatprep.subr.bf16.mxu0 %v1490_v2  ;;  %v1515_v20 = vld [vmem:[#allocation2 + $0x18] sm:$0xff]   ;;  %v1516_v21 = vld [vmem:[#allocation2 + $0x20] sm:$0xff]   ;;  %v1505_v23 = vld [vmem:[#allocation2 + $0x68] sm:$0xff]   ;;  %p1754_p4 = pnand %p1753_p3, %p1747_p0 }
  0x87   :  { %v1506_v22 = vld [vmem:[#allocation7 + $0x20] sm:$0xff]   ;;  %v1508_v24 = vld [vmem:[#allocation2 + $0x70] sm:$0xff]   ;;  %v1507_v25 = vld [vmem:[#allocation7 + $0x28] sm:$0xff]  }
  0x88   :  { %v1517_v26 = vld [vmem:[#allocation2 + $0x28] sm:$0xff]   ;;  %v1518_v27 = vld [vmem:[#allocation2 + $0x30] sm:$0xff]   ;;  %v1509_v29 = vld [vmem:[#allocation2 + $0x78] sm:$0xff]  }
  0x89   :  { %1470 = vmatpush3.bf16.msra.mxu1 %v1490_v2  ;;  %1321 = vmatpush3.bf16.msra.mxu0 %v1490_v2  ;;  %v1510_v28 = vld [vmem:[#allocation7 + $0x30] sm:$0xff]   ;;  %v1511_v30 = vld [vmem:[#allocation7 + $0x38] sm:$0xff]   ;;  %v1520_v32 = vld [vmem:[#allocation11] sm:$0xff]  }
  0x8a   :  { %1463 = vmatprep.subr.bf16.mxu1 %v1491_v3  ;;  %1322 = vmatprep.subr.bf16.mxu0 %v1491_v3  ;;  %v1519_v31 = vld [vmem:[#allocation2 + $0x38] sm:$0xff]   ;;  %v1521_v33 = vld [vmem:[#allocation11 + $0x8] sm:$0xff]   ;;  %v1524_v36 = vld [vmem:[#allocation11 + $0x20] sm:$0xff]  }
  0x8b   :  { %v1522_v34 = vld [vmem:[#allocation11 + $0x10] sm:$0xff]   ;;  %v1523_v35 = vld [vmem:[#allocation11 + $0x18] sm:$0xff]   ;;  %v1525_v37 = vld [vmem:[#allocation11 + $0x28] sm:$0xff]  }
  0x8c   :  { %v1526_v38 = vld [vmem:[#allocation11 + $0x30] sm:$0xff]   ;;  %v1527_v39 = vld [vmem:[#allocation11 + $0x38] sm:$0xff]  }
  0x8d   :  { %1471 = vmatpush3.bf16.msra.mxu1 %v1491_v3  ;;  %1323 = vmatpush3.bf16.msra.mxu0 %v1491_v3 }
  0x8e   :  { %1464 = vmatprep.subr.bf16.mxu1 %v1492_v5  ;;  %1324 = vmatprep.subr.bf16.mxu0 %v1492_v5 }
  0x91   :  { %1472 = vmatpush3.bf16.msra.mxu1 %v1492_v5  ;;  %1325 = vmatpush3.bf16.msra.mxu0 %v1492_v5 }
  0x92   :  { %1465 = vmatprep.subr.bf16.mxu1 %v1493_v6  ;;  %1326 = vmatprep.subr.bf16.mxu0 %v1493_v6 }
  0x95   :  { %1473 = vmatpush3.bf16.msra.mxu1 %v1493_v6  ;;  %1327 = vmatpush3.bf16.msra.mxu0 %v1493_v6 }
  0x96   :  { %1466 = vmatprep.subr.bf16.mxu1 %v1494_v7  ;;  %1328 = vmatprep.subr.bf16.mxu0 %v1494_v7 }
  0x99   :  { %1474 = vmatpush3.bf16.msra.mxu1 %v1494_v7  ;;  %1329 = vmatpush3.bf16.msra.mxu0 %v1494_v7 }
  0x9a   :  { %1467 = vmatprep.subr.bf16.mxu1 %v1495_v8  ;;  %1330 = vmatprep.subr.bf16.mxu0 %v1495_v8 }
  0x9d   :  { %1475 = vmatpush3.bf16.msra.mxu1 %v1495_v8  ;;  %1331 = vmatpush3.bf16.msra.mxu0 %v1495_v8  ;;  %v2003_v8 = vld [vmem:[#allocation10] ss:$0 sm:$0xff] }
  0x9e   :  { %1364 = vmatprep.subr.bf16.mxu1 %v1498_v10  ;;  %1412 = vmatprep.subr.bf16.mxu0 %v1520_v32 }
  0xa0   :  { %1349 = vmatmul.mubr.bf16.vlgmr.msra.gmra.mrb[0].mxu1 %v1497_v11  ;;  %1333 = vmatmul.mubr.bf16.vlgmr.msra.gmra.mrb[0].mxu0 %v1513_v14 }
  0xa1   :  { %1365 = vmatpush3.bf16.msra.mxu1 %v1498_v10  ;;  %1352 = vmatprep.mubr.bf16.mxu1 %v1500_v13 }
  0xa2   :  { %1366 = vmatprep.subr.bf16.mxu1 %v1499_v12  ;;  %1336 = vmatprep.mubr.bf16.mxu0 %v1514_v15 }
  0xa3   :  { %1413 = vmatpush3.bf16.msra.mxu0 %v1520_v32 }
  0xa4   :  { %1414 = vmatprep.subr.bf16.mxu0 %v1521_v33 }
  0xa5   :  { %1367 = vmatpush3.bf16.msra.mxu1 %v1499_v12 }
  0xa6   :  { %1368 = vmatprep.subr.bf16.mxu1 %v1502_v16 }
  0xa7   :  { %1415 = vmatpush3.bf16.msra.mxu0 %v1521_v33 }
  0xa8   :  { %1353 = vmatmul.mubr.bf16.gmra.mrb[4].mxu1 %v1501_v17  ;;  %1337 = vmatmul.mubr.bf16.gmra.mrb[4].mxu0 %v1515_v20 }
  0xa9   :  { %1369 = vmatpush3.bf16.msra.mxu1 %v1502_v16  ;;  %1356 = vmatprep.mubr.bf16.mxu1 %v1504_v18 }
  0xaa   :  { %1370 = vmatprep.subr.bf16.mxu1 %v1503_v19  ;;  %1340 = vmatprep.mubr.bf16.mxu0 %v1516_v21 }
  0xab   :  { %1416 = vmatprep.subr.bf16.mxu0 %v1522_v34 }
  0xac   :  { %1417 = vmatpush3.bf16.msra.mxu0 %v1522_v34 }
  0xad   :  { %1371 = vmatpush3.bf16.msra.mxu1 %v1503_v19  ;;  %1418 = vmatprep.subr.bf16.mxu0 %v1523_v35 }
  0xae   :  { %1372 = vmatprep.subr.bf16.mxu1 %v1506_v22 }
  0xb0   :  { %1357 = vmatmul.mubr.bf16.gmra.mrb[8].mxu1 %v1505_v23  ;;  %1341 = vmatmul.mubr.bf16.gmra.mrb[8].mxu0 %v1517_v26 }
  0xb1   :  { %1373 = vmatpush3.bf16.msra.mxu1 %v1506_v22  ;;  %1360 = vmatprep.mubr.bf16.mxu1 %v1508_v24  ;;  %v2009_v22 = vld [vmem:[#allocation8] ss:$0 sm:$0xff] }
  0xb2   :  { %1374 = vmatprep.subr.bf16.mxu1 %v1507_v25  ;;  %1344 = vmatprep.mubr.bf16.mxu0 %v1518_v27 }
  0xb3   :  { %1419 = vmatpush3.bf16.msra.mxu0 %v1523_v35 }
  0xb4   :  { %1420 = vmatprep.subr.bf16.mxu0 %v1524_v36 }
  0xb5   :  { %1375 = vmatpush3.bf16.msra.mxu1 %v1507_v25 }
  0xb6   :  { %1376 = vmatprep.subr.bf16.mxu1 %v1510_v28 }
  0xb7   :  { %1421 = vmatpush3.bf16.msra.mxu0 %v1524_v36 }
  0xb8   :  { %1361 = vmatmul.mubr.bf16.gmra.mrb[12].mxu1 %v1509_v29  ;;  %1345 = vmatmul.mubr.bf16.gmra.mrb[12].mxu0 %v1519_v31 }
  0xb9   :  { %1377 = vmatpush3.bf16.msra.mxu1 %v1510_v28  ;;  %1380 = vmatprep.mubr.bf16.mxu1 %v1512_v9 }
  0xba   :  { %1378 = vmatprep.subr.bf16.mxu1 %v1511_v30  ;;  %1422 = vmatprep.subr.bf16.mxu0 %v1525_v37 }
  0xbb   :  { %1423 = vmatpush3.bf16.msra.mxu0 %v1525_v37 }
  0xbc   :  { %1424 = vmatprep.subr.bf16.mxu0 %v1526_v38 }
  0xbd   :  { %1379 = vmatpush3.bf16.msra.mxu1 %v1511_v30 }
  0xbf   :  { %1425 = vmatpush3.bf16.msra.mxu0 %v1526_v38 }
  0xc0   :  { %1381 = vmatmul.mubr.bf16.vlgmr.msra.gmra.mrb[16].mxu1 %v1513_v14  ;;  %1426 = vmatprep.subr.bf16.mxu0 %v1527_v39 }
  0xc1   :  { %1384 = vmatprep.mubr.bf16.mxu1 %v1514_v15 }
  0xc3   :  { %1427 = vmatpush3.bf16.msra.mxu0 %v1527_v39 }
  0xc8   :  { %1385 = vmatmul.mubr.bf16.gmra.mrb[20].mxu1 %v1515_v20 }
  0xc9   :  { %1388 = vmatprep.mubr.bf16.mxu1 %v1516_v21 }
  0xd0   :  { %1389 = vmatmul.mubr.bf16.gmra.mrb[24].mxu1 %v1517_v26 }
  0xd1   :  { %1392 = vmatprep.mubr.bf16.mxu1 %v1518_v27 }
  0xd8   :  { %1393 = vmatmul.mubr.bf16.gmra.mrb[28].mxu1 %v1519_v31 }
  0xd9   :  { %1396 = vmatprep.mubr.bf16.mxu1 %v1941_v4 }
  0xe0   :  { %1397 = vmatmul.mubr.bf16.gmra.mrb[32].mxu1 %v1497_v11 }
  0xe1   :  { %1400 = vmatprep.mubr.bf16.mxu1 %v1500_v13 }
  0xe8   :  { %1401 = vmatmul.mubr.bf16.gmra.mrb[36].mxu1 %v1501_v17 }
  0xe9   :  { %1404 = vmatprep.mubr.bf16.mxu1 %v1504_v18 }
  0xf0   :  { %1405 = vmatmul.mubr.bf16.gmra.mrb[40].mxu1 %v1505_v23 }
  0xf1   :  { %1408 = vmatprep.mubr.bf16.mxu1 %v1508_v24 }
  0xf8   :  { %1409 = vmatmul.mubr.bf16.gmra.mrb[44].mxu1 %v1509_v29 }
 0x173   :  { %v1350_v40 = vpop.f32.mrb[0].mxu1  ;;  %v1945_v41 = vpop.f32.mrb[0].mxu0 }
 0x174   :  { %v414_v42 = vpop.f32.mrb[1].mxu1  ;;  %v1947_v43 = vpop.f32.mrb[1].mxu0  ;;  %v2015_v30 = vadd.f32 %v1350_v40, %v2009_v22  ;;  %v359_v35 = vadd.f32 %v1945_v41, %v2009_v22 }
 0x175   :  { %v1351_v44 = vpop.f32.mrb[2].mxu1  ;;  %v1949_v45 = vpop.f32.mrb[2].mxu0  ;;  %v2021_v33 = vadd.f32 %v2009_v22, %v414_v42  ;;  %v351_v38 = vadd.f32 %v2009_v22, %v1947_v43 }
 0x176   :  { %v1951_v46 = vpop.f32.mrb[3].mxu1  ;;  %v1953_v47 = vpop.f32.mrb[3].mxu0  ;;  %v2026_v36 = vadd.f32 %v1351_v44, %v2009_v22  ;;  %v362_v42 = vadd.f32 %v1949_v45, %v2009_v22 }
 0x177   :  { %v2033_v40 = vadd.f32 %v2009_v22, %v1951_v46  ;;  %v354_v41 = vadd.f32 %v2009_v22, %v1953_v47 }
 0x17b   :  { %v1955_v48 = vpop.f32.mrb[4].mxu1  ;;  %v1957_v49 = vpop.f32.mrb[4].mxu0 }
 0x17c   :  { %v1959_v50 = vpop.f32.mrb[5].mxu1  ;;  %v1961_v51 = vpop.f32.mrb[5].mxu0  ;;  %v375_v45 = vadd.f32 %v1957_v49, %v2009_v22 }
 0x17d   :  { %v1963_v52 = vpop.f32.mrb[6].mxu1  ;;  %v1965_v53 = vpop.f32.mrb[6].mxu0  ;;  %v367_v49 = vadd.f32 %v2009_v22, %v1961_v51 }
 0x17e   :  { %v1967_v54 = vpop.f32.mrb[7].mxu1  ;;  %v1969_v55 = vpop.f32.mrb[7].mxu0 }
 0x183   :  { %v1971_v56 = vpop.f32.mrb[8].mxu1  ;;  %v1973_v57 = vpop.f32.mrb[8].mxu0 }
 0x184   :  { %v1975_v58 = vpop.f32.mrb[9].mxu1  ;;  %v1977_v59 = vpop.f32.mrb[9].mxu0 }
 0x185   :  { %v1979_v60 = vpop.f32.mrb[10].mxu1  ;;  %v1981_v61 = vpop.f32.mrb[10].mxu0 }
 0x186   :  { %v1983_v62 = vpop.f32.mrb[11].mxu1  ;;  %v1985_v63 = vpop.f32.mrb[11].mxu0 }
 0x18b   :  { %v1987_v0 = vpop.f32.mrb[12].mxu1  ;;  %v1989_v1 = vpop.f32.mrb[12].mxu0 }
 0x18c   :  { %v1991_v2 = vpop.f32.mrb[13].mxu1  ;;  %v1993_v3 = vpop.f32.mrb[13].mxu0 }
 0x18d   :  { %v1995_v4 = vpop.f32.mrb[14].mxu1  ;;  %v1997_v5 = vpop.f32.mrb[14].mxu0 }
 0x18e   :  { %v1999_v6 = vpop.f32.mrb[15].mxu1  ;;  %v2001_v7 = vpop.f32.mrb[15].mxu0 }
 0x193   :  { %v1382_v9 = vpop.f32.mrb[16].mxu1 }
 0x194   :  { %v591_v10 = vadd.f32 %v1382_v9, %v2003_v8  ;;  %v582_v11 = vpop.f32.mrb[17].mxu1  ;;  %v2041_v9 = vadd.f32 %v1955_v48, %v2009_v22 }
 0x195   :  { %v583_v12 = vadd.f32 %v2003_v8, %v582_v11  ;;  %v1383_v13 = vpop.f32.mrb[18].mxu1 }
 0x196   :  { %v743_v14 = vmul.f32 0.70710677, %v591_v10  ;;  %v594_v15 = vadd.f32 %v1383_v13, %v2003_v8  ;;  %v585_v16 = vpop.f32.mrb[19].mxu1  ;;  %v711_v11 = vmul.f32 0.5, %v591_v10 }
 0x197   :  { %v741_v17 = vmul.f32 0.70710677, %v583_v12  ;;  %v586_v18 = vadd.f32 %v2003_v8, %v585_v16  ;;  %v709_v16 = vmul.f32 0.5, %v583_v12 }
 0x198   :  { %1528 = verf.f32 %v743_v14  ;;  %v744_v19 = vmul.f32 0.70710677, %v594_v15 }
 0x199   :  { %1530 = verf.f32 %v741_v17  ;;  %v742_v20 = vmul.f32 0.70710677, %v586_v18 }
 0x19a   :  { %1532 = verf.f32 %v744_v19 }
 0x19b   :  { %1534 = verf.f32 %v742_v20  ;;  %v1386_v21 = vpop.f32.mrb[20].mxu1  ;;  %v712_v20 = vmul.f32 0.5, %v594_v15 }
 0x19c   :  { %v607_v23 = vadd.f32 %v1386_v21, %v2003_v8  ;;  %v598_v24 = vpop.f32.mrb[21].mxu1 }
 0x19d   :  { %v599_v25 = vadd.f32 %v2003_v8, %v598_v24  ;;  %v1387_v26 = vpop.f32.mrb[22].mxu1 }
 0x19e   :  { %v747_v27 = vmul.f32 0.70710677, %v607_v23  ;;  %v610_v28 = vadd.f32 %v1387_v26, %v2003_v8  ;;  %v601_v29 = vpop.f32.mrb[23].mxu1  ;;  %v710_v26 = vmul.f32 0.5, %v586_v18 }
 0x19f   :  { %v745_v31 = vmul.f32 0.70710677, %v599_v25  ;;  %v2018_v32 = vadd.f32 %v2003_v8, %v601_v29 }
 0x1a0   :  { %1536 = verf.f32 %v747_v27  ;;  %v748_v34 = vmul.f32 0.70710677, %v610_v28 }
 0x1a1   :  { %1538 = verf.f32 %v745_v31  ;;  %v746_v37 = vmul.f32 0.70710677, %v2018_v32 }
 0x1a2   :  { %v1529_v39 = vpop.eup %1528  ;;  %1540 = verf.f32 %v748_v34 }
 0x1a3   :  { %v1531_v44 = vpop.eup %1530  ;;  %v807_v13 = vadd.f32 1.0, %v1529_v39  ;;  %1542 = verf.f32 %v746_v37  ;;  %v1390_v43 = vpop.f32.mrb[24].mxu1 }
 0x1a4   :  { %v1533_v14 = vpop.eup %1532  ;;  %v805_v46 = vadd.f32 1.0, %v1531_v44  ;;  %v2044_v17 = vadd.f32 %v1390_v43, %v2003_v8  ;;  %v614_v19 = vpop.f32.mrb[25].mxu1 }
 0x1a5   :  { %v1535_v47 = vpop.eup %1534  ;;  %v808_v21 = vadd.f32 1.0, %v1533_v14  ;;  %v839_v24 = vmul.f32 %v807_v13, %v711_v11  ;;  %v2049_v48 = vadd.f32 %v2003_v8, %v614_v19  ;;  %v1391_v10 = vpop.f32.mrb[26].mxu1  ;;  %v715_v14 = vmul.f32 0.5, %v607_v23 }
 0x1a6   :  { %v806_v27 = vadd.f32 1.0, %v1535_v47  ;;  %v837_v29 = vmul.f32 %v805_v46, %v709_v16  ;;  %v751_v12 = vmul.f32 0.70710677, %v2044_v17  ;;  %v617_v31 = vpop.f32.mrb[27].mxu1  ;;  %v2056_v11 = vadd.f32 %v1391_v10, %v2003_v8 }
 0x1a7   :  { %v871_v34 = vmul.f32 %v839_v24, %v359_v35  ;;  %v840_v37 = vmul.f32 %v808_v21, %v712_v20  ;;  %v749_v39 = vmul.f32 0.70710677, %v2049_v48  ;;  %v2059_v18 = vadd.f32 %v2003_v8, %v617_v31 }
 0x1a8   :  { %v869_v15 = vmul.f32 %v837_v29, %v351_v38  ;;  %1544 = verf.f32 %v751_v12  ;;  %v838_v44 = vmul.f32 %v806_v27, %v710_v26  ;;  %v378_v35 = vadd.f32 %v1965_v53, %v2009_v22 }
 0x1a9   :  { %v872_v13 = vmul.f32 %v840_v37, %v362_v42  ;;  %1546 = verf.f32 %v749_v39  ;;  %v713_v16 = vmul.f32 0.5, %v599_v25  ;;  %v752_v51 = vmul.f32 0.70710677, %v2056_v11 }
 0x1aa   :  { %v1537_v43 = vpop.eup %1536  ;;  %v870_v46 = vmul.f32 %v838_v44, %v354_v41  ;;  %v716_v47 = vmul.f32 0.5, %v610_v28  ;;  %v750_v21 = vmul.f32 0.70710677, %v2059_v18  ;;  %v714_v12 = vmul.f32 0.5, %v2018_v32 }
 0x1ab   :  { %v1539_v38 = vpop.eup %1538  ;;  %v811_v19 = vadd.f32 1.0, %v1537_v43  ;;  %v902_v20 = vpack.c.bf16 %v872_v13, %v871_v34  ;;  %v1394_v42 = vpop.f32.mrb[28].mxu1  ;;  %1548 = verf.f32 %v752_v51  ;;  %v370_v43 = vadd.f32 %v2009_v22, %v1969_v55 }
 0x1ac   :  { %v1541_v24 = vpop.eup %1540  ;;  %v809_v10 = vadd.f32 1.0, %v1539_v38  ;;  %v2066_v26 = vadd.f32 %v1394_v42, %v2003_v8  ;;  %v630_v53 = vpop.f32.mrb[29].mxu1  ;;  %v901_v27 = vpack.c.bf16 %v870_v46, %v869_v15  ;;  %1550 = verf.f32 %v750_v21 }
 0x1ad   :  { %v1543_v23 = vpop.eup %1542  ;;  %v812_v25 = vadd.f32 1.0, %v1541_v24  ;;  %v843_v41 = vmul.f32 %v811_v19, %v715_v14  ;;  %v2069_v29 = vadd.f32 %v2003_v8, %v630_v53  ;;  %v1395_v28 = vpop.f32.mrb[30].mxu1  ;;  %v719_v19 = vmul.f32 0.5, %v2044_v17 }
 0x1ae   :  { %v810_v31 = vadd.f32 1.0, %v1543_v23  ;;  %v841_v34 = vmul.f32 %v809_v10, %v713_v16  ;;  %v755_v37 = vmul.f32 0.70710677, %v2066_v26  ;;  %v633_v39 = vpop.f32.mrb[31].mxu1  ;;  %1428 = vmatprep.mubr.bf16.mxu0 %v901_v27  ;;  %v2077_v51 = vadd.f32 %v1395_v28, %v2003_v8 }
 0x1af   :  { %v875_v44 = vmul.f32 %v843_v41, %v375_v45  ;;  %v844_v13 = vmul.f32 %v812_v25, %v716_v47  ;;  %v753_v15 = vmul.f32 0.70710677, %v2069_v29  ;;  %1429 = vmatmul.mubr.bf16.vlgmr.msra.gmra.mrb[16].mxu0 %v902_v20  ;;  %v2080_v16 = vadd.f32 %v2003_v8, %v633_v39 }
 0x1b0   :  { %v873_v14 = vmul.f32 %v841_v34, %v367_v49  ;;  %1552 = verf.f32 %v755_v37  ;;  %v842_v46 = vmul.f32 %v810_v31, %v714_v12  ;;  %v391_v45 = vadd.f32 %v1973_v57, %v2009_v22 }
 0x1b1   :  { %v876_v32 = vmul.f32 %v844_v13, %v378_v35  ;;  %1554 = verf.f32 %v753_v15  ;;  %v756_v55 = vmul.f32 0.70710677, %v2077_v51  ;;  %v383_v49 = vadd.f32 %v2009_v22, %v1977_v59 }
 0x1b2   :  { %v1545_v38 = vpop.eup %1544  ;;  %v874_v47 = vmul.f32 %v842_v46, %v370_v43  ;;  %v717_v35 = vmul.f32 0.5, %v2049_v48  ;;  %v754_v42 = vmul.f32 0.70710677, %v2080_v16  ;;  %v394_v59 = vadd.f32 %v1981_v61, %v2009_v22 }
 0x1b3   :  { %v1547_v20 = vpop.eup %1546  ;;  %v815_v21 = vadd.f32 1.0, %v1545_v38  ;;  %v1398_v24 = vpop.f32.mrb[32].mxu1  ;;  %v904_v10 = vpack.c.bf16 %v876_v32, %v875_v44  ;;  %1556 = verf.f32 %v756_v55  ;;  %v386_v31 = vadd.f32 %v2009_v22, %v1985_v63 }
 0x1b4   :  { %v813_v53 = vadd.f32 1.0, %v1547_v20  ;;  %v2091_v57 = vadd.f32 %v1398_v24, %v2003_v8  ;;  %v646_v17 = vpop.f32.mrb[33].mxu1  ;;  %v903_v27 = vpack.c.bf16 %v874_v47, %v873_v14  ;;  %1558 = verf.f32 %v754_v42 }
 0x1b5   :  { %v847_v23 = vmul.f32 %v815_v21, %v719_v19  ;;  %v2096_v25 = vadd.f32 %v2003_v8, %v646_v17  ;;  %v1399_v48 = vpop.f32.mrb[34].mxu1  ;;  %v1549_v41 = vpop.eup %1548  ;;  %v720_v44 = vmul.f32 0.5, %v2056_v11  ;;  %v718_v43 = vmul.f32 0.5, %v2059_v18 }
 0x1b6   :  { %v845_v28 = vmul.f32 %v813_v53, %v717_v35  ;;  %v759_v12 = vmul.f32 0.70710677, %v2091_v57  ;;  %v2102_v34 = vadd.f32 %v1399_v48, %v2003_v8  ;;  %v649_v37 = vpop.f32.mrb[35].mxu1  ;;  %1432 = vmatprep.mubr.bf16.mxu0 %v903_v27  ;;  %v1551_v39 = vpop.eup %1550  ;;  %v816_v61 = vadd.f32 1.0, %v1549_v41 }
 0x1b7   :  { %v2105_v13 = vmul.f32 %v847_v23, %v391_v45  ;;  %v757_v15 = vmul.f32 0.70710677, %v2096_v25  ;;  %1433 = vmatmul.mubr.bf16.gmra.mrb[20].mxu0 %v904_v10  ;;  %v814_v14 = vadd.f32 1.0, %v1551_v39  ;;  %v2111_v38 = vadd.f32 %v2003_v8, %v649_v37 }
 0x1b8   :  { %v877_v46 = vmul.f32 %v845_v28, %v383_v49  ;;  %1560 = verf.f32 %v759_v12  ;;  %v848_v63 = vmul.f32 %v816_v61, %v720_v44  ;;  %v760_v32 = vmul.f32 0.70710677, %v2102_v34 }
 0x1b9   :  { %1562 = verf.f32 %v757_v15  ;;  %v723_v11 = vmul.f32 0.5, %v2066_v26  ;;  %v846_v45 = vmul.f32 %v814_v14, %v718_v43  ;;  %v407_v47 = vadd.f32 %v1989_v1, %v2009_v22 }
 0x1ba   :  { %v1553_v19 = vpop.eup %1552  ;;  %v399_v18 = vadd.f32 %v2009_v22, %v1993_v3  ;;  %v721_v20 = vmul.f32 0.5, %v2069_v29  ;;  %v880_v21 = vmul.f32 %v848_v63, %v394_v59  ;;  %1564 = verf.f32 %v760_v32 }
 0x1bb   :  { %v1555_v55 = vpop.eup %1554  ;;  %v819_v49 = vadd.f32 1.0, %v1553_v19  ;;  %v1402_v35 = vpop.f32.mrb[36].mxu1  ;;  %v878_v24 = vmul.f32 %v846_v45, %v386_v31  ;;  %v758_v10 = vmul.f32 0.70710677, %v2111_v38  ;;  %v410_v1 = vadd.f32 %v1997_v5, %v2009_v22 }
 0x1bc   :  { %v817_v42 = vadd.f32 1.0, %v1555_v55  ;;  %v2121_v26 = vadd.f32 %v1402_v35, %v2003_v8  ;;  %v662_v53 = vpop.f32.mrb[37].mxu1  ;;  %v906_v29 = vpack.c.bf16 %v880_v21, %v2105_v13  ;;  %v724_v59 = vmul.f32 0.5, %v2077_v51 }
 0x1bd   :  { %v851_v17 = vmul.f32 %v819_v49, %v723_v11  ;;  %v2126_v3 = vadd.f32 %v2003_v8, %v662_v53  ;;  %v1403_v27 = vpop.f32.mrb[38].mxu1  ;;  %v1557_v23 = vpop.eup %1556  ;;  %1566 = verf.f32 %v758_v10  ;;  %v722_v37 = vmul.f32 0.5, %v2080_v16 }
 0x1be   :  { %v849_v48 = vmul.f32 %v817_v42, %v721_v20  ;;  %v763_v41 = vmul.f32 0.70710677, %v2121_v26  ;;  %v665_v28 = vpop.f32.mrb[39].mxu1  ;;  %v1559_v12 = vpop.eup %1558  ;;  %v820_v31 = vadd.f32 1.0, %v1557_v23  ;;  %v2136_v13 = vadd.f32 %v1403_v27, %v2003_v8 }
 0x1bf   :  { %v2132_v39 = vmul.f32 %v851_v17, %v407_v47  ;;  %v761_v5 = vmul.f32 0.70710677, %v2126_v3  ;;  %v818_v44 = vadd.f32 1.0, %v1559_v12  ;;  %v2139_v15 = vadd.f32 %v2003_v8, %v665_v28 }
 0x1c0   :  { %v881_v61 = vmul.f32 %v849_v48, %v399_v18  ;;  %1568 = verf.f32 %v763_v41  ;;  %v852_v51 = vmul.f32 %v820_v31, %v724_v59  ;;  %v905_v43 = vpack.c.bf16 %v878_v24, %v877_v46 }
 0x1c1   :  { %1570 = verf.f32 %v761_v5  ;;  %v727_v63 = vmul.f32 0.5, %v2091_v57  ;;  %v402_v16 = vadd.f32 %v2009_v22, %v2001_v7  ;;  %v850_v32 = vmul.f32 %v818_v44, %v722_v37 }
 0x1c2   :  { %v1561_v14 = vpop.eup %1560  ;;  %v764_v19 = vmul.f32 0.70710677, %v2136_v13  ;;  %v725_v47 = vmul.f32 0.5, %v2096_v25  ;;  %v884_v18 = vmul.f32 %v852_v51, %v410_v1  ;;  %v762_v55 = vmul.f32 0.70710677, %v2139_v15  ;;  %1436 = vmatprep.mubr.bf16.mxu0 %v905_v43 }
 0x1c3   :  { %v1563_v11 = vpop.eup %1562  ;;  %v823_v45 = vadd.f32 1.0, %v1561_v14  ;;  %v1406_v49 = vpop.f32.mrb[40].mxu1  ;;  %v882_v46 = vmul.f32 %v850_v32, %v402_v16  ;;  %1437 = vmatmul.mubr.bf16.gmra.mrb[24].mxu0 %v906_v29  ;;  %v728_v35 = vmul.f32 0.5, %v2102_v34  ;;  %v431_v29 = vadd.f32 %v2009_v22, %v1959_v50 }
 0x1c4   :  { %v821_v20 = vadd.f32 1.0, %v1563_v11  ;;  %1572 = verf.f32 %v764_v19  ;;  %v2148_v57 = vadd.f32 %v1406_v49, %v2003_v8  ;;  %v678_v7 = vpop.f32.mrb[41].mxu1  ;;  %v1565_v21 = vpop.eup %1564  ;;  %v908_v24 = vpack.c.bf16 %v884_v18, %v2132_v39 }
 0x1c5   :  { %1574 = verf.f32 %v762_v55  ;;  %v2152_v42 = vadd.f32 %v2003_v8, %v678_v7  ;;  %v1407_v25 = vpop.f32.mrb[42].mxu1  ;;  %v855_v10 = vmul.f32 %v823_v45, %v727_v63  ;;  %v824_v17 = vadd.f32 1.0, %v1565_v21 }
 0x1c6   :  { %v853_v53 = vmul.f32 %v821_v20, %v725_v47  ;;  %v767_v1 = vmul.f32 0.70710677, %v2148_v57  ;;  %v681_v27 = vpop.f32.mrb[43].mxu1  ;;  %v2160_v34 = vadd.f32 %v1407_v25, %v2003_v8  ;;  %v907_v28 = vpack.c.bf16 %v882_v46, %v881_v61 }
 0x1c7   :  { %v765_v23 = vmul.f32 0.70710677, %v2152_v42  ;;  %v2163_v59 = vadd.f32 %v2003_v8, %v681_v27  ;;  %v1567_v48 = vpop.eup %1566  ;;  %v856_v41 = vmul.f32 %v824_v17, %v728_v35  ;;  %v726_v31 = vmul.f32 0.5, %v2111_v38 }
 0x1c8   :  { %1576 = verf.f32 %v767_v1  ;;  %v885_v12 = vmul.f32 %v853_v53, %v2021_v33  ;;  %v822_v37 = vadd.f32 1.0, %v1567_v48  ;;  %v768_v50 = vmul.f32 0.70710677, %v2160_v34  ;;  %1440 = vmatprep.mubr.bf16.mxu0 %v907_v28 }
 0x1c9   :  { %1578 = verf.f32 %v765_v23  ;;  %v442_v5 = vadd.f32 %v1963_v52, %v2009_v22  ;;  %v766_v44 = vmul.f32 0.70710677, %v2163_v59  ;;  %v887_v51 = vmul.f32 %v855_v10, %v2015_v30 }
 0x1ca   :  { %v1569_v39 = vpop.eup %1568  ;;  %v888_v43 = vmul.f32 %v856_v41, %v2026_v36  ;;  %v854_v14 = vmul.f32 %v822_v37, %v726_v31  ;;  %v729_v38 = vmul.f32 0.5, %v2126_v3  ;;  %1580 = verf.f32 %v768_v50 }
 0x1cb   :  { %v1571_v61 = vpop.eup %1570  ;;  %v827_v33 = vadd.f32 1.0, %v1569_v39  ;;  %v1410_v63 = vpop.f32.mrb[44].mxu1  ;;  %1582 = verf.f32 %v766_v44  ;;  %1441 = vmatmul.mubr.bf16.gmra.mrb[28].mxu0 %v908_v24  ;;  %v434_v30 = vadd.f32 %v2009_v22, %v1967_v54  ;;  %v731_v36 = vmul.f32 0.5, %v2121_v26 }
 0x1cc   :  { %v825_v16 = vadd.f32 1.0, %v1571_v61  ;;  %v2175_v32 = vadd.f32 %v1410_v63, %v2003_v8  ;;  %v694_v52 = vpop.f32.mrb[45].mxu1  ;;  %v910_v19 = vpack.c.bf16 %v888_v43, %v887_v51  ;;  %v886_v3 = vmul.f32 %v854_v14, %v2033_v40 }
 0x1cd   :  { %v2181_v11 = vadd.f32 %v2003_v8, %v694_v52  ;;  %v1411_v45 = vpop.f32.mrb[46].mxu1  ;;  %v732_v55 = vmul.f32 0.5, %v2136_v13  ;;  %v859_v21 = vmul.f32 %v827_v33, %v731_v36  ;;  %v730_v25 = vmul.f32 0.5, %v2139_v15 }
 0x1ce   :  { %v1573_v47 = vpop.eup %1572  ;;  %v857_v18 = vmul.f32 %v825_v16, %v729_v38  ;;  %v771_v49 = vmul.f32 0.70710677, %v2175_v32  ;;  %v706_v20 = vadd.f32 %v1411_v45, %v2003_v8  ;;  %v697_v46 = vpop.f32.mrb[47].mxu1  ;;  %v735_v13 = vmul.f32 0.5, %v2148_v57 }
 0x1cf   :  { %v1575_v7 = vpop.eup %1574  ;;  %v828_v54 = vadd.f32 1.0, %v1573_v47  ;;  %v769_v26 = vmul.f32 0.70710677, %v2181_v11  ;;  %v698_v35 = vadd.f32 %v2003_v8, %v697_v46  ;;  %v909_v27 = vpack.c.bf16 %v886_v3, %v885_v12 }
 0x1d0   :  { %v826_v24 = vadd.f32 1.0, %v1575_v7  ;;  %1584 = verf.f32 %v771_v49  ;;  %v772_v40 = vmul.f32 0.70710677, %v706_v20  ;;  %v889_v23 = vmul.f32 %v857_v18, %v431_v29 }
 0x1d1   :  { %v860_v10 = vmul.f32 %v828_v54, %v732_v55  ;;  %1586 = verf.f32 %v769_v26  ;;  %v770_v53 = vmul.f32 0.70710677, %v698_v35  ;;  %v891_v8 = vmul.f32 %v859_v21, %v2041_v9  ;;  %1444 = vmatprep.mubr.bf16.mxu0 %v909_v27 }
 0x1d2   :  { %v1577_v17 = vpop.eup %1576  ;;  %v858_v1 = vmul.f32 %v826_v24, %v730_v25  ;;  %1588 = verf.f32 %v772_v40  ;;  %v733_v15 = vmul.f32 0.5, %v2152_v42  ;;  %v455_v57 = vadd.f32 %v1971_v56, %v2009_v22 }
 0x1d3   :  { %v1579_v48 = vpop.eup %1578  ;;  %v831_v41 = vadd.f32 1.0, %v1577_v17  ;;  %1590 = verf.f32 %v770_v53  ;;  %v892_v28 = vmul.f32 %v860_v10, %v442_v5  ;;  %v447_v39 = vadd.f32 %v2009_v22, %v1975_v58  ;;  %1445 = vmatmul.mubr.bf16.gmra.mrb[32].mxu0 %v910_v19 }
 0x1d4   :  { %v829_v31 = vadd.f32 1.0, %v1579_v48  ;;  %v890_v37 = vmul.f32 %v858_v1, %v434_v30  ;;  %v1581_v50 = vpop.eup %1580  ;;  %v736_v9 = vmul.f32 0.5, %v2160_v34  ;;  %v734_v42 = vmul.f32 0.5, %v2163_v59 }
 0x1d5   :  { %v863_v12 = vmul.f32 %v831_v41, %v735_v13  ;;  %v912_v29 = vpack.c.bf16 %v892_v28, %v891_v8  ;;  %v1583_v44 = vpop.eup %1582  ;;  %v832_v5 = vadd.f32 1.0, %v1581_v50  ;;  %v458_v33 = vadd.f32 %v1979_v60, %v2009_v22 }
 0x1d6   :  { %v861_v51 = vmul.f32 %v829_v31, %v733_v15  ;;  %v911_v43 = vpack.c.bf16 %v890_v37, %v889_v23  ;;  %v830_v61 = vadd.f32 1.0, %v1583_v44  ;;  %v450_v58 = vadd.f32 %v2009_v22, %v1983_v62 }
 0x1d7   :  { %v895_v14 = vmul.f32 %v863_v12, %v455_v57  ;;  %v864_v56 = vmul.f32 %v832_v5, %v736_v9  ;;  %v739_v34 = vmul.f32 0.5, %v2175_v32  ;;  %v471_v45 = vadd.f32 %v1987_v0, %v2009_v22 }
 0x1d8   :  { %1448 = vmatprep.mubr.bf16.mxu0 %v911_v43  ;;  %v893_v38 = vmul.f32 %v861_v51, %v447_v39  ;;  %v862_v63 = vmul.f32 %v830_v61, %v734_v42  ;;  %v737_v60 = vmul.f32 0.5, %v2181_v11  ;;  %v740_v49 = vmul.f32 0.5, %v706_v20 }
 0x1d9   :  { %v896_v52 = vmul.f32 %v864_v56, %v458_v33  ;;  %v463_v7 = vadd.f32 %v2009_v22, %v1991_v2  ;;  %v738_v21 = vmul.f32 0.5, %v698_v35  ;;  %v474_v26 = vadd.f32 %v1995_v4, %v2009_v22  ;;  %v2213_v2 = vld [vmem:[#allocation13] ss:$0 sm:$0xff] }
 0x1da   :  { %v1585_v16 = vpop.eup %1584  ;;  %v894_v36 = vmul.f32 %v862_v63, %v450_v58  ;;  %v466_v25 = vadd.f32 %v2009_v22, %v1999_v6 }
 0x1db   :  { %v1587_v19 = vpop.eup %1586  ;;  %v835_v30 = vadd.f32 1.0, %v1585_v16  ;;  %v914_v47 = vpack.c.bf16 %v896_v52, %v895_v14  ;;  %1449 = vmatmul.mubr.bf16.gmra.mrb[36].mxu0 %v912_v29 }
 0x1dc   :  { %v1589_v59 = vpop.eup %1588  ;;  %v833_v3 = vadd.f32 1.0, %v1587_v19  ;;  %v913_v46 = vpack.c.bf16 %v894_v36, %v893_v38 }
 0x1dd   :  { %v1591_v18 = vpop.eup %1590  ;;  %v867_v55 = vmul.f32 %v835_v30, %v739_v34  ;;  %v836_v62 = vadd.f32 1.0, %v1589_v59 }
 0x1de   :  { %v865_v32 = vmul.f32 %v833_v3, %v737_v60  ;;  %v834_v54 = vadd.f32 1.0, %v1591_v18  ;;  %1452 = vmatprep.mubr.bf16.mxu0 %v913_v46 }
 0x1df   :  { %v868_v0 = vmul.f32 %v836_v62, %v740_v49  ;;  %v899_v11 = vmul.f32 %v867_v55, %v471_v45 }
 0x1e0   :  { %v866_v24 = vmul.f32 %v834_v54, %v738_v21  ;;  %v897_v20 = vmul.f32 %v865_v32, %v463_v7 }
 0x1e1   :  { %v900_v40 = vmul.f32 %v868_v0, %v474_v26 }
 0x1e2   :  { %v898_v10 = vmul.f32 %v866_v24, %v466_v25 }
 0x1e3   :  { %v916_v13 = vpack.c.bf16 %v900_v40, %v899_v11  ;;  %1453 = vmatmul.mubr.bf16.gmra.mrb[40].mxu0 %v914_v47 }
 0x1e4   :  { %v915_v53 = vpack.c.bf16 %v898_v10, %v897_v20 }
 0x1e6   :  { %1456 = vmatprep.mubr.bf16.mxu0 %v915_v53 }
 0x1eb   :  { %1457 = vmatmul.mubr.bf16.gmra.mrb[44].mxu0 %v916_v13 }
 0x282   :  { %v1430_v35 = vpop.f32.mrb[16].mxu0 }
 0x283   :  { %v1031_v4 = vadd.f32 %v1430_v35, %v2213_v2  ;;  %v1022_v17 = vpop.f32.mrb[17].mxu0 }
 0x284   :  { %v1023_v1 = vadd.f32 %v2213_v2, %v1022_v17  ;;  %v1431_v27 = vpop.f32.mrb[18].mxu0 }
 0x285   :  { %1151 = vst [vmem:[#allocation14 + $0x10] sm:$0xff] %v1031_v4  ;;  %v1034_v6 = vadd.f32 %v1431_v27, %v2213_v2  ;;  %v1025_v22 = vpop.f32.mrb[19].mxu0 }
 0x286   :  { %1149 = vst [vmem:[#allocation14] sm:$0xff] %v1023_v1  ;;  %v1026_v23 = vadd.f32 %v2213_v2, %v1025_v22 }
 0x287   :  { %1152 = vst [vmem:[#allocation14 + $0x18] sm:$0xff] %v1034_v6 }
 0x288   :  { %1150 = vst [vmem:[#allocation14 + $0x8] sm:$0xff] %v1026_v23 }
 0x28a   :  { %v1434_v48 = vpop.f32.mrb[20].mxu0 }
 0x28b   :  { %v1047_v41 = vadd.f32 %v1434_v48, %v2213_v2  ;;  %v1038_v8 = vpop.f32.mrb[21].mxu0 }
 0x28c   :  { %v1039_v28 = vadd.f32 %v2213_v2, %v1038_v8  ;;  %v1435_v15 = vpop.f32.mrb[22].mxu0 }
 0x28d   :  { %1155 = vst [vmem:[#allocation14 + $0x30] sm:$0xff] %v1047_v41  ;;  %v1050_v31 = vadd.f32 %v1435_v15, %v2213_v2  ;;  %v1041_v37 = vpop.f32.mrb[23].mxu0 }
 0x28e   :  { %1153 = vst [vmem:[#allocation14 + $0x20] sm:$0xff] %v1039_v28  ;;  %v1042_v50 = vadd.f32 %v2213_v2, %v1041_v37 }
 0x28f   :  { %1156 = vst [vmem:[#allocation14 + $0x38] sm:$0xff] %v1050_v31 }
 0x290   :  { %1154 = vst [vmem:[#allocation14 + $0x28] sm:$0xff] %v1042_v50 }
 0x296   :  { %v1438_v57 = vpop.f32.mrb[24].mxu0 }
 0x297   :  { %v1063_v39 = vadd.f32 %v1438_v57, %v2213_v2  ;;  %v1054_v12 = vpop.f32.mrb[25].mxu0 }
 0x298   :  { %v1055_v29 = vadd.f32 %v2213_v2, %v1054_v12  ;;  %v1439_v44 = vpop.f32.mrb[26].mxu0 }
 0x299   :  { %1159 = vst [vmem:[#allocation14 + $0x50] sm:$0xff] %v1063_v39  ;;  %v1066_v51 = vadd.f32 %v1439_v44, %v2213_v2  ;;  %v1057_v9 = vpop.f32.mrb[27].mxu0 }
 0x29a   :  { %1157 = vst [vmem:[#allocation14 + $0x40] sm:$0xff] %v1055_v29  ;;  %v1058_v5 = vadd.f32 %v2213_v2, %v1057_v9 }
 0x29b   :  { %1160 = vst [vmem:[#allocation14 + $0x58] sm:$0xff] %v1066_v51 }
 0x29c   :  { %1158 = vst [vmem:[#allocation14 + $0x48] sm:$0xff] %v1058_v5 }
 0x29e   :  { %v1442_v43 = vpop.f32.mrb[28].mxu0 }
 0x29f   :  { %v1079_v42 = vadd.f32 %v1442_v43, %v2213_v2  ;;  %v1070_v61 = vpop.f32.mrb[29].mxu0 }
 0x2a0   :  { %v1071_v14 = vadd.f32 %v2213_v2, %v1070_v61  ;;  %v1443_v33 = vpop.f32.mrb[30].mxu0 }
 0x2a1   :  { %1163 = vst [vmem:[#allocation14 + $0x70] sm:$0xff] %v1079_v42  ;;  %v1082_v56 = vadd.f32 %v1443_v33, %v2213_v2  ;;  %v1073_v38 = vpop.f32.mrb[31].mxu0 }
 0x2a2   :  { %1161 = vst [vmem:[#allocation14 + $0x60] sm:$0xff] %v1071_v14  ;;  %v1074_v58 = vadd.f32 %v2213_v2, %v1073_v38 }
 0x2a3   :  { %1164 = vst [vmem:[#allocation14 + $0x78] sm:$0xff] %v1082_v56 }
 0x2a4   :  { %1162 = vst [vmem:[#allocation14 + $0x68] sm:$0xff] %v1074_v58 }
 0x2a6   :  { %v1446_v63 = vpop.f32.mrb[32].mxu0 }
 0x2a7   :  { %v1095_v16 = vadd.f32 %v1446_v63, %v2213_v2  ;;  %v1086_v52 = vpop.f32.mrb[33].mxu0 }
 0x2a8   :  { %v1087_v19 = vadd.f32 %v2213_v2, %v1086_v52  ;;  %v1447_v34 = vpop.f32.mrb[34].mxu0 }
 0x2a9   :  { %1167 = vst [vmem:[#allocation14 + $0x90] sm:$0xff] %v1095_v16  ;;  %v1098_v30 = vadd.f32 %v1447_v34, %v2213_v2  ;;  %v1089_v36 = vpop.f32.mrb[35].mxu0 }
 0x2aa   :  { %1165 = vst [vmem:[#allocation14 + $0x80] sm:$0xff] %v1087_v19  ;;  %v1090_v59 = vadd.f32 %v2213_v2, %v1089_v36 }
 0x2ab   :  { %1168 = vst [vmem:[#allocation14 + $0x98] sm:$0xff] %v1098_v30 }
 0x2ac   :  { %1166 = vst [vmem:[#allocation14 + $0x88] sm:$0xff] %v1090_v59 }
 0x2ae   :  { %v1450_v45 = vpop.f32.mrb[36].mxu0 }
 0x2af   :  { %v1111_v60 = vadd.f32 %v1450_v45, %v2213_v2  ;;  %v1102_v3 = vpop.f32.mrb[37].mxu0 }
 0x2b0   :  { %v1103_v47 = vadd.f32 %v2213_v2, %v1102_v3  ;;  %v1451_v18 = vpop.f32.mrb[38].mxu0 }
 0x2b1   :  { %1171 = vst [vmem:[#allocation14 + $0xb0] sm:$0xff] %v1111_v60  ;;  %v1114_v55 = vadd.f32 %v1451_v18, %v2213_v2  ;;  %v1105_v49 = vpop.f32.mrb[39].mxu0 }
 0x2b2   :  { %1169 = vst [vmem:[#allocation14 + $0xa0] sm:$0xff] %v1103_v47  ;;  %v1106_v62 = vadd.f32 %v2213_v2, %v1105_v49 }
 0x2b3   :  { %1172 = vst [vmem:[#allocation14 + $0xb8] sm:$0xff] %v1114_v55 }
 0x2b4   :  { %1170 = vst [vmem:[#allocation14 + $0xa8] sm:$0xff] %v1106_v62 }
 0x2b6   :  { %v1454_v46 = vpop.f32.mrb[40].mxu0 }
 0x2b7   :  { %v1127_v7 = vadd.f32 %v1454_v46, %v2213_v2  ;;  %v1118_v32 = vpop.f32.mrb[41].mxu0 }
 0x2b8   :  { %v1119_v21 = vadd.f32 %v2213_v2, %v1118_v32  ;;  %v1455_v54 = vpop.f32.mrb[42].mxu0 }
 0x2b9   :  { %1175 = vst [vmem:[#allocation14 + $0xd0] sm:$0xff] %v1127_v7  ;;  %v1130_v26 = vadd.f32 %v1455_v54, %v2213_v2  ;;  %v1121_v0 = vpop.f32.mrb[43].mxu0 }
 0x2ba   :  { %1173 = vst [vmem:[#allocation14 + $0xc0] sm:$0xff] %v1119_v21  ;;  %v1122_v11 = vadd.f32 %v2213_v2, %v1121_v0 }
 0x2bb   :  { %1176 = vst [vmem:[#allocation14 + $0xd8] sm:$0xff] %v1130_v26 }
 0x2bc   :  { %1174 = vst [vmem:[#allocation14 + $0xc8] sm:$0xff] %v1122_v11 }
 0x2be   :  { %v1458_v25 = vpop.f32.mrb[44].mxu0 }
 0x2bf   :  { %v1143_v24 = vadd.f32 %v1458_v25, %v2213_v2  ;;  %v1134_v20 = vpop.f32.mrb[45].mxu0 }
 0x2c0   :  { %v1135_v40 = vadd.f32 %v2213_v2, %v1134_v20  ;;  %v1459_v10 = vpop.f32.mrb[46].mxu0 }
 0x2c1   :  { %1179 = vst [vmem:[#allocation14 + $0xf0] sm:$0xff] %v1143_v24  ;;  %v1146_v13 = vadd.f32 %v1459_v10, %v2213_v2  ;;  %v1137_v53 = vpop.f32.mrb[47].mxu0 }
 0x2c2   :  { %1177 = vst [vmem:[#allocation14 + $0xe0] sm:$0xff] %v1135_v40  ;;  %v1138_v35 = vadd.f32 %v2213_v2, %v1137_v53 }
 0x2c3   :  { %1180 = vst [vmem:[#allocation14 + $0xf8] sm:$0xff] %v1146_v13 }
 0x2c4   :  { %1178 = vst [vmem:[#allocation14 + $0xe8] sm:$0xff] %v1138_v35 }
 0x2c5   :  { %1757 = shalt.err (!%p1754_p4)
}
 0x2c6   :  { %s1758_s27 = scalar_lea.hbm %s2266_s7, 4096 }
 0x2c7   :  { %p1759_p5 = scmp.ne.s32.totalorder %s2266_s7, %s1758_s27  ;;  %p1762_p6 = scmp.lt.u32.totalorder %s1758_s27, %s2266_s7 }
 0x2c9   :  { %p1764_p7 = pnand %p1762_p6, %p1759_p5 }
 0x2cb   :  { %1767 = shalt.err (!%p1764_p7)
}
 0x2cc   :  { %s1788_s22 = smov 128   ;;  %s1789_s23 = smov 8  }
 0x2cd   :  { %1192 = dma.vmem_to_hbm [thread:$0]  %s1187_s17, 4096, %s2266_s7, [#allocation4], %s1788_s22, %s1788_s22, %s1789_s23  }
 0x2ce   :  { %1776 = dma.done.wait [#allocation4], 4096  }
 0x2cf   :  { %1777 = vsyncadd [#allocation4], 4294963200 }
 0x2d0   :  { %1196 = vsyncpa [#allocation3], 1 }
 0x2d1   :  { %1197 = vsyncpa [#allocation6], 1 }
 0x2d2   :  { %1198 = vsyncpa [#allocation9], 1 }
 0x2d3   :  { %1199 = vsyncpa [#allocation12], 1 }
 0x2d4   :  { %1200 = vsyncpa [#allocation4], 1 }

</bundles_post_ra>
